<compile_context>
chip_gen: v6e
topology: v6e:2x2x1
jax: 0.10.0
libtpu: 0.0.40
codegen_flags: <defaults>
</compile_context>

<pallas_src>
import jax
import jax.numpy as jnp
from jax.experimental import pallas as pl
from jax.experimental.pallas import tpu as pltpu

HIDDEN = 10              # fixed by the module: fc1 -> 10 -> fc2
LN_EPS = 1e-5            # nn.LayerNorm default eps
PACK = 8                 # batch rows packed side-by-side into the lane axis
ROW_QUANTUM = PACK * 8   # 8 packed sublane rows -> batch tiles in multiples of 64


def toy_model_kernel(x_ref, w1_ref, m_ref, w2_ref, bias_ref, o_ref):
    # One kernel row holds PACK independent batch rows side by side in lanes;
    # all weights are block-diagonal, so lanes never mix across batch rows.
    # Everything stays f32: the kernel is HBM-bound, bf16 on the MXU would only
    # cost accuracy.
    # fc1: (tbp, PACK*in) @ (PACK*in, PACK*hid), f32 accumulation on the MXU.
    h = jnp.dot(x_ref[...], w1_ref[...], preferred_element_type=jnp.float32)
    h = jnp.maximum(h, 0.0)                                    # ReLU (VPU)
    # LayerNorm statistics per 10-lane group via a block-averaging matmul
    # (MXU slack is free here).  Biased variance like torch; clamp >= 0 so f32
    # cancellation in E[h^2]-E[h]^2 can never feed a negative into rsqrt.
    mean = jnp.dot(h, m_ref[...], preferred_element_type=jnp.float32)
    mean_sq = jnp.dot(h * h, m_ref[...], preferred_element_type=jnp.float32)
    var = jnp.maximum(mean_sq - mean * mean, 0.0)
    h_norm = (h - mean) * jax.lax.rsqrt(var + LN_EPS)
    # fc2 with the LayerNorm affine pre-folded into w2/bias (block-diagonal).
    y = jnp.dot(h_norm, w2_ref[...], preferred_element_type=jnp.float32)
    o_ref[...] = (y + bias_ref[...]).astype(o_ref.dtype)


def _round_up(a, b):
    return (a + b - 1) // b * b


def toy_model_forward(x, w1, gamma, beta, w2, *, block_b=16384):
    """x: (B, in); w1: (in, 10) pre-transposed; gamma/beta: (10,); w2: (10, out)."""
    B, in_features = x.shape
    hidden, out_features = w2.shape
    assert w1.shape == (in_features, hidden)
    assert hidden == HIDDEN

    x = x.astype(jnp.float32)

    # Fold the LayerNorm affine into fc2 (one-time wrapper cost):
    #   (h_norm*gamma + beta) @ W2 == h_norm @ (gamma[:,None]*W2) + beta @ W2
    w2_eff = (gamma.reshape(hidden, 1) * w2).astype(jnp.float32)            # (hid, out)
    bias = (beta.reshape(1, hidden) @ w2).astype(jnp.float32)               # (1, out)

    # Block-diagonal weights for the lane-packed formulation (tiny, built once).
    eye = jnp.eye(PACK, dtype=jnp.float32)
    w1_block = jnp.kron(eye, w1.astype(jnp.float32))                        # (PACK*in, PACK*hid)
    m_block = jnp.kron(eye, jnp.full((hidden, hidden), 1.0 / hidden,
                                     jnp.float32))                          # (PACK*hid, PACK*hid)
    w2_block = jnp.kron(eye, w2_eff)                                        # (PACK*hid, PACK*out)
    bias_block = jnp.tile(bias, (1, PACK))                                  # (1, PACK*out)

    # Batch tile: large enough that per-step HBM traffic dwarfs the ~0.35us
    # per-step pipeline overhead; quantised to ROW_QUANTUM rows.
    tb = _round_up(min(block_b, _round_up(B, ROW_QUANTUM)), ROW_QUANTUM)
    if tb >= _round_up(B, ROW_QUANTUM) and tb > ROW_QUANTUM:
        # Whole batch fits in a single tile: split it so the "parallel" grid
        # axis can feed both v7x TensorCores and the pipeline has overlap.
        tb = _round_up(tb // 2, ROW_QUANTUM)
    b_pad = _round_up(B, tb)
    if b_pad != B:
        x = jnp.pad(x, ((0, b_pad - B), (0, 0)))   # zero rows are harmless
    # Row-major reshape (bitcast, no data movement): (b_pad, in) -> (b_pad/8, 8*in)
    x_packed = x.reshape(b_pad // PACK, PACK * in_features)

    tbp = tb // PACK
    rows_p = b_pad // PACK
    grid = (b_pad // tb,)

    flops = (2 * rows_p * (PACK * in_features) * (PACK * hidden)
             + 2 * 2 * rows_p * (PACK * hidden) ** 2
             + 2 * rows_p * (PACK * hidden) * (PACK * out_features))
    bytes_accessed = (x_packed.size + w1_block.size + m_block.size
                      + w2_block.size + bias_block.size
                      + rows_p * PACK * out_features) * 4

    out_packed = pl.pallas_call(
        toy_model_kernel,
        out_shape=jax.ShapeDtypeStruct((rows_p, PACK * out_features), jnp.float32),
        grid_spec=pltpu.PrefetchScalarGridSpec(
            num_scalar_prefetch=0,
            grid=grid,
            in_specs=[
                pl.BlockSpec((tbp, PACK * in_features), lambda i: (i, 0)),  # x tile
                pl.BlockSpec(w1_block.shape, lambda i: (0, 0)),             # resident
                pl.BlockSpec(m_block.shape, lambda i: (0, 0)),              # resident
                pl.BlockSpec(w2_block.shape, lambda i: (0, 0)),             # resident
                pl.BlockSpec(bias_block.shape, lambda i: (0, 0)),           # resident
            ],
            out_specs=pl.BlockSpec((tbp, PACK * out_features), lambda i: (i, 0)),
        ),
        compiler_params=pltpu.CompilerParams(
            dimension_semantics=("parallel",),
            # Headroom for very large block_b (packed tiles cost ~384 B/row,
            # so even tb=32K stays far below this); fits v7x's 64 MiB VMEM.
            vmem_limit_bytes=48 * 1024 * 1024),
        cost_estimate=pl.CostEstimate(
            flops=flops,
            transcendentals=rows_p * PACK * hidden,
            bytes_accessed=bytes_accessed),
    )(x_packed, w1_block, m_block, w2_block, bias_block)

    # Free row-major reshape back to (B, out), dropping padded rows.
    return out_packed.reshape(b_pad, out_features)[:B]


def init_params(key, in_features, out_features):
    k1, k2, k3, k4 = jax.random.split(key, 4)
    bound1 = 1.0 / jnp.sqrt(in_features)
    bound2 = 1.0 / jnp.sqrt(HIDDEN)
    # Weights stored pre-transposed: (in, out), kaiming-uniform-like bound.
    w1 = jax.random.uniform(k1, (in_features, HIDDEN), jnp.float32,
                            minval=-bound1, maxval=bound1)
    w2 = jax.random.uniform(k2, (HIDDEN, out_features), jnp.float32,
                            minval=-bound2, maxval=bound2)
    # Non-default LN affine so the fold-into-fc2 path is actually exercised.
    gamma = 1.0 + 0.1 * jax.random.normal(k3, (HIDDEN,), jnp.float32)
    beta = 0.1 * jax.random.normal(k4, (HIDDEN,), jnp.float32)
    return w1, gamma, beta, w2


def reference_forward(x, w1, gamma, beta, w2):
    h = jnp.maximum(x @ w1, 0.0)
    mean = jnp.mean(h, axis=-1, keepdims=True)
    var = jnp.mean((h - mean) ** 2, axis=-1, keepdims=True)
    h = (h - mean) / jnp.sqrt(var + LN_EPS) * gamma.reshape(1, -1) + beta.reshape(1, -1)
    return h @ w2


if __name__ == "__main__":
    in_features, out_features, batch = 32, 16, 200
    key = jax.random.PRNGKey(0)
    kx, kp = jax.random.split(key)
    x = jax.random.normal(kx, (batch, in_features), jnp.float32)
    w1, gamma, beta, w2 = init_params(kp, in_features, out_features)

    ref = reference_forward(x, w1, gamma, beta, w2)

    # Default block_b: the single covering tile is split into a grid of 2
    # "parallel" steps (megacore path).  block_b=64 exercises a 4-step
    # pipelined grid plus the batch-padding path (200 % 64 != 0).
    for bb in (16384, 64):
        out = jax.block_until_ready(
            toy_model_forward(x, w1, gamma, beta, w2, block_b=bb))
        assert out.shape == (batch, out_features)
        err = float(jnp.max(jnp.abs(out - ref)))
        # All-f32 math (no bf16 MXU casts) -> tolerance tightened vs. previous 5e-2.
        assert jnp.allclose(out, ref, atol=2e-2, rtol=2e-2), \
            f"block_b={bb}: max abs err {err}"
    print("KERNEL_OK")
</pallas_src>

<mosaic_0001>
module attributes {stable_mosaic.version = 11 : i64} {
  func.func @toy_model_kernel(%arg0: i32, %arg1: memref<16x256xf32, #tpu.memory_space<vmem>>, %arg2: memref<256x80xf32, #tpu.memory_space<vmem>>, %arg3: memref<80x80xf32, #tpu.memory_space<vmem>>, %arg4: memref<80x128xf32, #tpu.memory_space<vmem>>, %arg5: memref<1x128xf32, #tpu.memory_space<vmem>>, %arg6: memref<16x128xf32, #tpu.memory_space<vmem>>) attributes {dimension_semantics = [#tpu.dimension_semantics<parallel>], iteration_bounds = array<i64: 2>, scalar_prefetch = 0 : i64, scratch_operands = 0 : i64, tpu.core_type = #tpu.core_type<tc>, window_params = [{transform_indices = @transform_0, window_bounds = array<i64: 16, 256>}, {pipeline_mode = #tpu.pipeline_mode<synchronous>, transform_indices = @transform_1, window_bounds = array<i64: 256, 80>}, {pipeline_mode = #tpu.pipeline_mode<synchronous>, transform_indices = @transform_2, window_bounds = array<i64: 80, 80>}, {pipeline_mode = #tpu.pipeline_mode<synchronous>, transform_indices = @transform_3, window_bounds = array<i64: 80, 128>}, {pipeline_mode = #tpu.pipeline_mode<synchronous>, transform_indices = @transform_4, window_bounds = array<i64: 1, 128>}, {transform_indices = @transform_5, window_bounds = array<i64: 16, 128>}]} {
    %c0 = arith.constant 0 : index
    %c0_0 = arith.constant 0 : index
    %0 = vector.load %arg1[%c0, %c0_0] : memref<16x256xf32, #tpu.memory_space<vmem>>, vector<16x256xf32>
    %c0_1 = arith.constant 0 : index
    %c0_2 = arith.constant 0 : index
    %1 = vector.load %arg2[%c0_1, %c0_2] : memref<256x80xf32, #tpu.memory_space<vmem>>, vector<256x80xf32>
    %cst = arith.constant dense<0.000000e+00> : vector<16x80xf32>
    %2 = tpu.matmul %0, %1, %cst {dimension_numbers = #tpu.dot_dimension_numbers<[1], [0], [0], [1], [0, 0, 1, 1], [], []>} : vector<16x256xf32>, vector<256x80xf32>, vector<16x80xf32> -> vector<16x80xf32>
    %cst_3 = arith.constant 0.000000e+00 : f32
    %3 = vector.broadcast %cst_3 : f32 to vector<16x80xf32>
    %4 = arith.maximumf %2, %3 : vector<16x80xf32>
    %c0_4 = arith.constant 0 : index
    %c0_5 = arith.constant 0 : index
    %5 = vector.load %arg3[%c0_4, %c0_5] : memref<80x80xf32, #tpu.memory_space<vmem>>, vector<80x80xf32>
    %cst_6 = arith.constant dense<0.000000e+00> : vector<16x80xf32>
    %6 = tpu.matmul %4, %5, %cst_6 {dimension_numbers = #tpu.dot_dimension_numbers<[1], [0], [0], [1], [0, 0, 1, 1], [], []>} : vector<16x80xf32>, vector<80x80xf32>, vector<16x80xf32> -> vector<16x80xf32>
    %7 = arith.mulf %4, %4 : vector<16x80xf32>
    %c0_7 = arith.constant 0 : index
    %c0_8 = arith.constant 0 : index
    %8 = vector.load %arg3[%c0_7, %c0_8] : memref<80x80xf32, #tpu.memory_space<vmem>>, vector<80x80xf32>
    %cst_9 = arith.constant dense<0.000000e+00> : vector<16x80xf32>
    %9 = tpu.matmul %7, %8, %cst_9 {dimension_numbers = #tpu.dot_dimension_numbers<[1], [0], [0], [1], [0, 0, 1, 1], [], []>} : vector<16x80xf32>, vector<80x80xf32>, vector<16x80xf32> -> vector<16x80xf32>
    %10 = arith.mulf %6, %6 : vector<16x80xf32>
    %11 = arith.subf %9, %10 : vector<16x80xf32>
    %cst_10 = arith.constant 0.000000e+00 : f32
    %12 = vector.broadcast %cst_10 : f32 to vector<16x80xf32>
    %13 = arith.maximumf %11, %12 : vector<16x80xf32>
    %14 = arith.subf %4, %6 : vector<16x80xf32>
    %cst_11 = arith.constant 9.99999974E-6 : f32
    %15 = vector.broadcast %cst_11 : f32 to vector<16x80xf32>
    %16 = arith.addf %13, %15 : vector<16x80xf32>
    %17 = math.rsqrt %16 : vector<16x80xf32>
    %18 = arith.mulf %14, %17 : vector<16x80xf32>
    %c0_12 = arith.constant 0 : index
    %c0_13 = arith.constant 0 : index
    %19 = vector.load %arg4[%c0_12, %c0_13] : memref<80x128xf32, #tpu.memory_space<vmem>>, vector<80x128xf32>
    %cst_14 = arith.constant dense<0.000000e+00> : vector<16x128xf32>
    %20 = tpu.matmul %18, %19, %cst_14 {dimension_numbers = #tpu.dot_dimension_numbers<[1], [0], [0], [1], [0, 0, 1, 1], [], []>} : vector<16x80xf32>, vector<80x128xf32>, vector<16x128xf32> -> vector<16x128xf32>
    %c0_15 = arith.constant 0 : index
    %c0_16 = arith.constant 0 : index
    %21 = vector.load %arg5[%c0_15, %c0_16] : memref<1x128xf32, #tpu.memory_space<vmem>>, vector<1x128xf32>
    %22 = vector.broadcast %21 : vector<1x128xf32> to vector<16x128xf32>
    %23 = arith.addf %20, %22 : vector<16x128xf32>
    %c0_17 = arith.constant 0 : index
    %c0_18 = arith.constant 0 : index
    %24 = vector.load %arg6[%c0_17, %c0_18] : memref<16x128xf32, #tpu.memory_space<vmem>>, vector<16x128xf32>
    tpu.vector_store %arg6[%c0_17, %c0_18], %23 {strides = array<i32>} : memref<16x128xf32, #tpu.memory_space<vmem>>, vector<16x128xf32>,
    return
  }
  func.func @transform_0(%arg0: i32) -> (i32, i32) {
    %c0_i32 = arith.constant 0 : i32
    %c0_i32_0 = arith.constant 0 : i32
    return %arg0, %c0_i32 : i32, i32
  }
  func.func @transform_1(%arg0: i32) -> (i32, i32) {
    %c0_i32 = arith.constant 0 : i32
    %c0_i32_0 = arith.constant 0 : i32
    %c0_i32_1 = arith.constant 0 : i32
    return %c0_i32, %c0_i32_0 : i32, i32
  }
  func.func @transform_2(%arg0: i32) -> (i32, i32) {
    %c0_i32 = arith.constant 0 : i32
    %c0_i32_0 = arith.constant 0 : i32
    %c0_i32_1 = arith.constant 0 : i32
    return %c0_i32, %c0_i32_0 : i32, i32
  }
  func.func @transform_3(%arg0: i32) -> (i32, i32) {
    %c0_i32 = arith.constant 0 : i32
    %c0_i32_0 = arith.constant 0 : i32
    %c0_i32_1 = arith.constant 0 : i32
    return %c0_i32, %c0_i32_0 : i32, i32
  }
  func.func @transform_4(%arg0: i32) -> (i32, i32) {
    %c0_i32 = arith.constant 0 : i32
    %c0_i32_0 = arith.constant 0 : i32
    %c0_i32_1 = arith.constant 0 : i32
    return %c0_i32, %c0_i32_0 : i32, i32
  }
  func.func @transform_5(%arg0: i32) -> (i32, i32) {
    %c0_i32 = arith.constant 0 : i32
    %c0_i32_0 = arith.constant 0 : i32
    return %arg0, %c0_i32 : i32, i32
  }
}

</mosaic_0001>

<bundles_post_ra>
// kernel: tpu_custom_call.1
= control target key start
LH: loop header
LB: loop body
LE: loop exit
PB: predicated region body
PF: predicated region fallthrough
CT: control target
= control target key end

     0   :  { %10 = vsyncpa [#allocation3], 0  ;;  %s1326_s0 = inlined_call_operand.vmem [shape: f32[32,256], index: 0, kind: input, shape index: {}]   ;;  %s1327_s1 = inlined_call_operand.vmem [shape: f32[256,80], index: 1, kind: input, shape index: {}]   ;;  %s1328_s2 = inlined_call_operand.vmem [shape: f32[80,80], index: 2, kind: input, shape index: {}]   ;;  %s1329_s3 = inlined_call_operand.vmem [shape: f32[80,128], index: 3, kind: input, shape index: {}]   ;;  %s1330_s4 = inlined_call_operand.vmem [shape: f32[1,128], index: 4, kind: input, shape index: {}]   ;;  %s1331_s5 = inlined_call_operand.hbm [shape: f32[32,128], index: 5, kind: output, shape index: {}]  }
   0x1   :  { %12 = vsyncpa [#allocation3 + $0x1], 0  ;;  %s1012_s18 = smov 0   ;;  %s1014_s19 = smov 0  }
   0x2   :  { %s1016_s20 = smov 0   ;;  %s1018_s21 = smov 0  }
   0x3 LB: > { %s1033_s22 = sadd.s32 4294967295, %s977_s21   ;;  %s707_s23 = sadd.s32 4294967294, %s977_s21   ;;  %s977_s21 = sphi %s1018_s21, %s1337_s21   ;;  %s973_s20 = sphi %s1016_s20, %s1336_s20   ;;  %s969_s19 = sphi %s1014_s19, %s1335_s19   ;;  %s965_s18 = sphi %s1012_s18, %s1334_s18  }
   0x4   : > { %s1037_s24 = sadd.s32 1, %s977_s21   ;;  %s135_s25 = sadd.s32 1, %s973_s20 }
   0x5   : > { %s132_s26 = ssub.s32 %s977_s21, %s1037_s24  ;;  %p145_p0 = scmp.ne.s32.totalorder %s973_s20, %s969_s19 }
   0x6   : > { %p133_p1 = scmp.eq.s32.totalorder %s132_s26, 0  ;;  %p146_p2 = scmp.eq.s32.totalorder %s1033_s22, 1 }
   0x7   : > { %p151_p3 = scmp.ne.s32.totalorder %s969_s19, %s965_s18  ;;  %p152_p4 = scmp.eq.s32.totalorder %s707_s23, 1 }
   0x8   : > { %s1048_s27 = scalar_select %p133_p1, %s973_s20, %s135_s25  }
   0x9   : > { %p1050_p5 = por %p146_p2, %p145_p0  ;;  %p1054_p6 = por %p152_p4, %p151_p3 }
   0xa   : > { %p710_p7 = scmp.ge.s32.totalorder %s977_s21, 1  ;;  %p192_p8 = scmp.lt.s32.totalorder %s977_s21, 3 }
   0xc   : > { %p193_p9 = pnand %p710_p7, %p192_p8 }
   0xd   : > { %s712_s11 = sshll.u32 (!%p193_p9), %s1033_s22, 1  ;;  %s218_s30 = sand.u32 (!%p193_p9), 1, %s969_s19  }
   0xe   : > { %196 = sbr.rel (%p193_p9) target bundleno = 704 (0x2c0), region = 40  ;;  %p222_p10 = scmp.lt.s32.totalorder (!%p193_p9), %s712_s11, 3 }
   0xf   : > { %s728_s12 = sshll.u32 (!%p193_p9), %s1033_s22, 8  ;;  %s1286_s16 = scalar_lea.sflag (!%p193_p9), [#allocation3], %s218_s30 }
  0x10   : > { %s1284_s15 = scalar_lea.hbm (!%p193_p9), %s1331_s5, %s728_s12  ;;  %s979_s22 = smov (!%p193_p9), [#allocation2]  }
  0x11   : > { %s921_s17 = sshll.u32 (!%p193_p9), %s979_s22, 4  ;;  %s922_s17 = int_to_ptr.vmem [resolvable:$false] %s921_s17 }
  0x12   : > { %s923_s23 = scalar_lea.vmem (!%p193_p9), %s922_s17, 512 }
  0x13   : > { %v264_v0 = vld [vmem:[%s1327_s1 + $0xf8] sm:$0xff]  ;;  %v263_v2 = vld [vmem:[%s1327_s1 + $0xf0] sm:$0xff]  ;;  %v262_v4 = vld [vmem:[%s1327_s1 + $0xe8] sm:$0xff]  ;;  %s1339_s11 = smov (!%p222_p10, %s712_s11), 3  ;;  %vm352_vm0 = vcmask 654336  }
  0x14   : > { %v248_v1 = vld [vmem:[%s1327_s1 + $0x78] sm:$0xff]  ;;  %729 = vmatprep.subr.mxu0 %v264_v0  ;;  %v247_v3 = vld [vmem:[%s1327_s1 + $0x70] sm:$0xff]  ;;  %v246_v5 = vld [vmem:[%s1327_s1 + $0x68] sm:$0xff]  ;;  %s727_s6 = sshll.u32 %s1339_s11, 4 }
  0x15   : > { %730 = vmatpush3.msra.mxu0 %v248_v1  ;;  %v261_v6 = vld [vmem:[%s1327_s1 + $0xe0] sm:$0xff]  ;;  %v260_v8 = vld [vmem:[%s1327_s1 + $0xd8] sm:$0xff]  ;;  %s1094_s14 = scalar_lea.vmem %s1326_s0, %s727_s6  ;;  %v259_v10 = vld [vmem:[%s1327_s1 + $0xd0] sm:$0xff]  ;;  %s711_s6 = sshll.u32 %s218_s30, 4 }
  0x16   : > { %731 = vmatprep.subr.mxu0 %v263_v2  ;;  %v245_v7 = vld [vmem:[%s1327_s1 + $0x60] sm:$0xff]  ;;  %v244_v9 = vld [vmem:[%s1327_s1 + $0x58] sm:$0xff]  ;;  %v243_v11 = vld [vmem:[%s1327_s1 + $0x50] sm:$0xff]  ;;  %s220_s9 = scalar_lea.vmem [#allocation2], %s711_s6 }
  0x17   : > { %732 = vmatpush3.msra.mxu0 %v247_v3  ;;  %v258_v12 = vld [vmem:[%s1327_s1 + $0xc8] sm:$0xff]  ;;  %v257_v15 = vld [vmem:[%s1327_s1 + $0xc0] sm:$0xff]  ;;  %v256_v19 = vld [vmem:[%s1327_s1 + $0xb8] sm:$0xff]  ;;  %s645_s10 = sshll.u32 %s220_s9, 4  ;;  %s1279_s10 = int_to_ptr.vmem [resolvable:$true] %s645_s10 }
  0x18   : > { %733 = vmatprep.subr.mxu0 %v262_v4  ;;  %v230_v13 = vld [vmem:[%s1094_s14 + $0x8] sm:$0xff]  ;;  %v1120_v17 = vld [vmem:[%s1328_s2 + $0x40] sm:$0xff]  ;;  %v1133_v20 = vld [vmem:[%s1328_s2 + $0x38] sm:$0xff]  ;;  %s917_s11 = scalar_lea.vmem %s1279_s10, 256  ;;  %p924_p0 = scmp.lt.s32.totalorder %s1279_s10, %s922_s17 }
  0x19   : > { %734 = vmatpush3.msra.mxu0 %v246_v5  ;;  %v242_v14 = vld [vmem:[%s1327_s1 + $0x48] sm:$0xff]  ;;  %329 = vmatprep.mubr.f32.mxu0 %v230_v13  ;;  %v241_v18 = vld [vmem:[%s1327_s1 + $0x40] sm:$0xff]  ;;  %v240_v21 = vld [vmem:[%s1327_s1 + $0x38] sm:$0xff]  ;;  %p918_p11 = scmp.ne.s32.totalorder %s1279_s10, %s917_s11  ;;  %p925_p1 = scmp.lt.s32.totalorder %s923_s23, %s917_s11 }
  0x1a   : > { %735 = vmatprep.subr.mxu0 %v261_v6  ;;  %v1115_v16 = vld [vmem:[%s1328_s2 + $0x48] sm:$0xff]  ;;  %v255_v22 = vld [vmem:[%s1327_s1 + $0xb0] sm:$0xff]  ;;  %v253_v28 = vld [vmem:[%s1327_s1 + $0xa0] sm:$0xff] }
  0x1b   : > { %736 = vmatpush3.msra.mxu0 %v245_v7  ;;  %803 = vmatprep.subr.mxu1 %v1115_v16  ;;  %v1146_v23 = vld [vmem:[%s1328_s2 + $0x30] sm:$0xff]  ;;  %v254_v25 = vld [vmem:[%s1327_s1 + $0xa8] sm:$0xff]  ;;  %v237_v29 = vld [vmem:[%s1327_s1 + $0x20] sm:$0xff]  ;;  %p919_p12 = pnand %p918_p11, %p1050_p5  ;;  %p926_p2 = por %p925_p1, %p924_p0 }
  0x1c   : > { %737 = vmatprep.subr.mxu0 %v260_v8  ;;  %804 = vmatpush3.msra.mxu1 %v1115_v16  ;;  %v239_v24 = vld [vmem:[%s1327_s1 + $0x30] sm:$0xff]  ;;  %v1159_v26 = vld [vmem:[%s1328_s2 + $0x28] sm:$0xff]  ;;  %v252_v30 = vld [vmem:[%s1327_s1 + $0x98] sm:$0xff] }
  0x1d   : > { %738 = vmatpush3.msra.mxu0 %v244_v9  ;;  %805 = vmatprep.subr.mxu1 %v1120_v17  ;;  %v238_v27 = vld [vmem:[%s1327_s1 + $0x28] sm:$0xff]  ;;  %v236_v31 = vld [vmem:[%s1327_s1 + $0x18] sm:$0xff]  ;;  %v251_v32 = vld [vmem:[%s1327_s1 + $0x90] sm:$0xff]  ;;  %p920_p13 = pneg %p919_p12 }
  0x1e   : > { %739 = vmatprep.subr.mxu0 %v259_v10  ;;  %806 = vmatpush3.msra.mxu1 %v1120_v17  ;;  %v235_v33 = vld [vmem:[%s1327_s1 + $0x10] sm:$0xff]  ;;  %v250_v34 = vld [vmem:[%s1327_s1 + $0x88] sm:$0xff]  ;;  %v249_v36 = vld [vmem:[%s1327_s1 + $0x80] sm:$0xff] }
  0x1f   : > { %740 = vmatpush3.msra.mxu0 %v243_v11  ;;  %807 = vmatprep.subr.mxu1 %v1133_v20  ;;  %v234_v35 = vld [vmem:[%s1327_s1 + $0x8] sm:$0xff]  ;;  %v233_v37 = vld [vmem:[%s1327_s1] sm:$0xff]  ;;  %v232_v39 = vld [vmem:[%s1094_s14 + $0x18] sm:$0xff]  ;;  %p927_p3 = pnand %p926_p2, %p920_p13 }
  0x20   : > { %741 = vmatprep.subr.mxu0 %v258_v12  ;;  %808 = vmatpush3.msra.mxu1 %v1133_v20  ;;  %v229_v38 = vld [vmem:[%s1094_s14] sm:$0xff]  ;;  %v231_v40 = vld [vmem:[%s1094_s14 + $0x10] sm:$0xff]  ;;  %v345_v42 = vld [vmem:[%s1328_s2 + $0x18] sm:$0xff] }
  0x21   : > { %742 = vmatpush3.msra.mxu0 %v242_v14  ;;  %809 = vmatprep.subr.mxu1 %v1146_v23  ;;  %v346_v41 = vld [vmem:[%s1328_s2 + $0x20] sm:$0xff]  ;;  %v344_v43 = vld [vmem:[%s1328_s2 + $0x10] sm:$0xff]  ;;  %v343_v44 = vld [vmem:[%s1328_s2 + $0x8] sm:$0xff] }
  0x22   : > { %743 = vmatprep.subr.mxu0 %v257_v15  ;;  %810 = vmatpush3.msra.mxu1 %v1146_v23  ;;  %v342_v45 = vld [vmem:[%s1328_s2] sm:$0xff]  ;;  %v540_v56 = vld [vmem:[%s1329_s3 + $0x48] sm:$0xff]  ;;  %v538_v58 = vld [vmem:[%s1329_s3 + $0x38] sm:$0xff] }
  0x23   : > { %744 = vmatpush3.msra.mxu0 %v241_v18  ;;  %811 = vmatprep.subr.mxu1 %v1159_v26  ;;  %v539_v57 = vld [vmem:[%s1329_s3 + $0x40] sm:$0xff]  ;;  %v537_v59 = vld [vmem:[%s1329_s3 + $0x30] sm:$0xff]  ;;  %v536_v60 = vld [vmem:[%s1329_s3 + $0x28] sm:$0xff] }
  0x24   : > { %745 = vmatprep.subr.mxu0 %v256_v19  ;;  %812 = vmatpush3.msra.mxu1 %v1159_v26  ;;  %v535_v61 = vld [vmem:[%s1329_s3 + $0x20] sm:$0xff]  ;;  %v534_v62 = vld [vmem:[%s1329_s3 + $0x18] sm:$0xff]  ;;  %v533_v63 = vld [vmem:[%s1329_s3 + $0x10] sm:$0xff] }
  0x25   : > { %746 = vmatpush3.msra.mxu0 %v240_v21  ;;  %813 = vmatprep.subr.mxu1 %v346_v41  ;;  %v532_v0 = vld [vmem:[%s1329_s3 + $0x8] sm:$0xff]  ;;  %v531_v1 = vld [vmem:[%s1329_s3] sm:$0xff] }
  0x26   : > { %747 = vmatprep.subr.mxu0 %v255_v22  ;;  %814 = vmatpush3.msra.mxu1 %v346_v41 }
  0x27   : > { %748 = vmatpush3.msra.mxu0 %v239_v24  ;;  %815 = vmatprep.subr.mxu1 %v345_v42 }
  0x28   : > { %749 = vmatprep.subr.mxu0 %v254_v25  ;;  %816 = vmatpush3.msra.mxu1 %v345_v42 }
  0x29   : > { %750 = vmatpush3.msra.mxu0 %v238_v27  ;;  %817 = vmatprep.subr.mxu1 %v344_v43 }
  0x2a   : > { %751 = vmatprep.subr.mxu0 %v253_v28  ;;  %818 = vmatpush3.msra.mxu1 %v344_v43 }
  0x2b   : > { %752 = vmatpush3.msra.mxu0 %v237_v29  ;;  %819 = vmatprep.subr.mxu1 %v343_v44 }
  0x2c   : > { %753 = vmatprep.subr.mxu0 %v252_v30  ;;  %820 = vmatpush3.msra.mxu1 %v343_v44 }
  0x2d   : > { %754 = vmatpush3.msra.mxu0 %v236_v31  ;;  %821 = vmatprep.subr.mxu1 %v342_v45 }
  0x2e   : > { %755 = vmatprep.subr.mxu0 %v251_v32  ;;  %822 = vmatpush3.msra.mxu1 %v342_v45 }
  0x2f   : > { %756 = vmatpush3.msra.mxu0 %v235_v33  ;;  %826 = vmatprep.subr.mxu1 %v1115_v16 }
  0x30   : > { %757 = vmatprep.subr.mxu0 %v250_v34 }
  0x31   : > { %758 = vmatpush3.msra.mxu0 %v234_v35 }
  0x32   : > { %759 = vmatprep.subr.mxu0 %v249_v36 }
  0x33   : > { %760 = vmatpush3.msra.mxu0 %v233_v37 }
  0x34   : > { %330 = vmatmul.mubr.f32.vlgmr.msra.gmra.mxu0 %v229_v38  ;;  %849 = vmatprep.subr.mxu0 %v540_v56 }
  0x35   : > { %334 = vmatprep.mubr.f32.mxu0 %v232_v39  ;;  %850 = vmatpush3.msra.mxu0 %v540_v56 }
  0x36   : > { %851 = vmatprep.subr.mxu0 %v539_v57 }
  0x37   : > { %852 = vmatpush3.msra.mxu0 %v539_v57 }
  0x38   : > { %335 = vmatmul.mubr.f32.gmra.mxu0 %v231_v40  ;;  %853 = vmatprep.subr.mxu0 %v538_v58 }
  0x39   : > { %854 = vmatpush3.msra.mxu0 %v538_v58 }
  0x3a   : > { %855 = vmatprep.subr.mxu0 %v537_v59 }
  0x3b   : > { %856 = vmatpush3.msra.mxu0 %v537_v59 }
  0x3c   : > { %857 = vmatprep.subr.mxu0 %v536_v60 }
  0x3d   : > { %858 = vmatpush3.msra.mxu0 %v536_v60 }
  0x3e   : > { %859 = vmatprep.subr.mxu0 %v535_v61 }
  0x3f   : > { %860 = vmatpush3.msra.mxu0 %v535_v61 }
  0x40   : > { %861 = vmatprep.subr.mxu0 %v534_v62 }
  0x41   : > { %862 = vmatpush3.msra.mxu0 %v534_v62 }
  0x42   : > { %863 = vmatprep.subr.mxu0 %v533_v63 }
  0x43   : > { %864 = vmatpush3.msra.mxu0 %v533_v63 }
  0x44   : > { %865 = vmatprep.subr.mxu0 %v532_v0 }
  0x45   : > { %866 = vmatpush3.msra.mxu0 %v532_v0 }
  0x46   : > { %867 = vmatprep.subr.mxu0 %v531_v1 }
  0x47   : > { %868 = vmatpush3.msra.mxu0 %v531_v1 }
  0xf4   : > { %v761_v46 = vpop.f32.mrf.mxu0 }
  0xf6   : > { %v762_v47 = vpop.f32.mrf.mxu0 }
  0xf7   : > { %v763_v48 = vadd.f32 %v762_v47, %v761_v46 }
  0xf8   : > { %v764_v49 = vpop.f32.mrf.mxu0 }
  0xf9   : > { %v1217_v50 = vmax.f32 %v763_v48, 0.0 }
  0xfa   : > { %v765_v51 = vpop.f32.mrf.mxu0 }
  0xfb   : > { %v766_v52 = vadd.f32 %v765_v51, %v764_v49  ;;  %823 = vmatprep.mubr.msk.f32.mxu1 %vm352_vm0, %v1217_v50  ;;  %v434_v54 = vmul.f32 %v1217_v50, %v1217_v50 }
  0xfd   : > { %v1221_v53 = vmax.f32 %v766_v52, 0.0 }
  0xff   : > { %824 = vmatmul.mubr.msk.f32.vlgmr.msra.gmra.mxu1 %vm352_vm0, %v1221_v53  ;;  %v435_v55 = vmul.f32 %v1221_v53, %v1221_v53 }
 0x100   : > { %827 = vmatpush3.msra.mxu1 %v1115_v16  ;;  %846 = vmatprep.mubr.msk.f32.mxu1 %vm352_vm0, %v434_v54 }
 0x101   : > { %828 = vmatprep.subr.mxu1 %v1120_v17 }
 0x102   : > { %829 = vmatpush3.msra.mxu1 %v1120_v17 }
 0x103   : > { %830 = vmatprep.subr.mxu1 %v1133_v20 }
 0x104   : > { %831 = vmatpush3.msra.mxu1 %v1133_v20  ;;  %v719_v20 = vld [vmem:[%s1330_s4] ss:$0 sm:$0xff] }
 0x105   : > { %832 = vmatprep.subr.mxu1 %v1146_v23 }
 0x106   : > { %833 = vmatpush3.msra.mxu1 %v1146_v23 }
 0x107   : > { %834 = vmatprep.subr.mxu1 %v1159_v26 }
 0x108   : > { %835 = vmatpush3.msra.mxu1 %v1159_v26 }
 0x109   : > { %836 = vmatprep.subr.mxu1 %v346_v41 }
 0x10a   : > { %837 = vmatpush3.msra.mxu1 %v346_v41 }
 0x10b   : > { %838 = vmatprep.subr.mxu1 %v345_v42 }
 0x10c   : > { %839 = vmatpush3.msra.mxu1 %v345_v42 }
 0x10d   : > { %840 = vmatprep.subr.mxu1 %v344_v43 }
 0x10e   : > { %841 = vmatpush3.msra.mxu1 %v344_v43 }
 0x10f   : > { %842 = vmatprep.subr.mxu1 %v343_v44 }
 0x110   : > { %843 = vmatpush3.msra.mxu1 %v343_v44 }
 0x111   : > { %844 = vmatprep.subr.mxu1 %v342_v45 }
 0x112   : > { %845 = vmatpush3.msra.mxu1 %v342_v45 }
 0x113   : > { %847 = vmatmul.mubr.msk.f32.vlgmr.msra.gmra.mxu1 %vm352_vm0, %v435_v55 }
 0x1bf   : > { %v825_v2 = vpop.f32.mrf.mxu1 }
 0x1c0   : > { %v518_v4 = vmul.f32 %v825_v2, %v825_v2  ;;  %v524_v17 = vsub.f32 %v1221_v53, %v825_v2 }
 0x1c1   : > { %v425_v3 = vpop.f32.mrf.mxu1 }
 0x1c2   : > { %v517_v6 = vmul.f32 %v425_v3, %v425_v3  ;;  %v523_v15 = vsub.f32 %v1217_v50, %v425_v3 }
 0x1d3   : > { %v848_v5 = vpop.f32.mrf.mxu1 }
 0x1d4   : > { %v520_v7 = vsub.f32 %v848_v5, %v518_v4 }
 0x1d5   : > { %v508_v8 = vpop.f32.mrf.mxu1 }
 0x1d6   : > { %v522_v9 = vmax.f32 %v520_v7, 0.0  ;;  %v519_v10 = vsub.f32 %v508_v8, %v517_v6 }
 0x1d8   : > { %v526_v11 = vadd.f32 1e-05, %v522_v9  ;;  %v521_v12 = vmax.f32 %v519_v10, 0.0 }
 0x1da   : > { %v525_v13 = vadd.f32 1e-05, %v521_v12  ;;  %913 = vrsqrt.f32 %v526_v11 }
 0x1dc   : > { %915 = vrsqrt.f32 %v525_v13 }
 0x1e7   : > { %v914_v14 = vpop.eup %913 }
 0x1e8   : > { %v530_v19 = vmul.f32 %v914_v14, %v524_v17 }
 0x1e9   : > { %v916_v16 = vpop.eup %915 }
 0x1ea   : > { %v529_v18 = vmul.f32 %v916_v16, %v523_v15 }
 0x1ec   : > { %869 = vmatprep.mubr.msk.f32.mxu0 %vm352_vm0, %v529_v18 }
 0x1ed   : > { %870 = vmatmul.mubr.msk.f32.vlgmr.msra.gmra.mxu0 %vm352_vm0, %v530_v19 }
 0x2ad   : > { %v871_v21 = vpop.f32.mrf.mxu0 }
 0x2ae   : > { %v626_v22 = vadd.f32 %v871_v21, %v719_v20 }
 0x2af   : > { %v620_v23 = vpop.f32.mrf.mxu0 }
 0x2b0   : > { %630 = vst [vmem:[%s220_s9 + $0x8] sm:$0xff] %v626_v22  ;;  %v621_v24 = vadd.f32 %v719_v20, %v620_v23 }
 0x2b2   : > { %629 = vst [vmem:[%s220_s9] sm:$0xff] %v621_v24 }
 0x2b3   : > { %930 = shalt.err (!%p927_p3)
}
 0x2b4   : > { %s931_s25 = scalar_lea.hbm %s1284_s15, 256  ;;  %s935_s6 = scalar_lea.hbm %s1331_s5, 512 }
 0x2b5   : > { %p932_p4 = scmp.ne.s32.totalorder %s1284_s15, %s931_s25  ;;  %p936_p9 = scmp.lt.s32.totalorder %s1284_s15, %s1331_s5 }
 0x2b6   : > { %p937_p10 = scmp.lt.s32.totalorder %s935_s6, %s931_s25 }
 0x2b7   : > { %p933_p7 = pnand %p932_p4, %p1050_p5 }
 0x2b8   : > { %p938_p11 = por %p937_p10, %p936_p9 }
 0x2b9   : > { %p934_p8 = pneg %p933_p7 }
 0x2bb   : > { %p939_p12 = pnand %p938_p11, %p934_p8 }
 0x2bd   : > { %942 = shalt.err (!%p939_p12)
}
 0x2be   : > { %s980_s9 = smov 128   ;;  %s981_s12 = smov 8  }
 0x2bf   : > { %872 = dma.vmem_to_hbm [thread:$0]  (%p1050_p5), %s1279_s10, 256, %s1284_s15, %s1286_s16, %s980_s9, %s980_s9, %s981_s12  }
 0x2c0 PF: > { %p878_p13 = scmp.ge.s32.totalorder %s977_s21, 2  ;;  %s660_s13 = sand.u32 1, %s965_s18  }
 0x2c1   : > { %s661_s14 = scalar_lea.sflag [#allocation3], %s660_s13 }
 0x2c2   : > { %p875_p0 = pnand %p878_p13, %p1054_p6 }
 0x2c4   : > { %p876_p1 = pneg %p875_p0 }
 0x2c6   : > { %960 = dma.done.wait (%p876_p1), %s661_s14, 256  }
 0x2c7   : > { %962 = vsyncadd (%p876_p1), %s661_s14, 4294967040  ;;  %p15_p2 = scmp.ge.s32.totalorder %s1037_s24, 4   ;;  %s1334_s18 = smov %s969_s19 }
 0x2c8   : > { %s1335_s19 = smov %s973_s20  ;;  %s1336_s20 = smov %s1048_s27 }
 0x2c9   : > { %s1337_s21 = smov %s1037_s24  ;;  %17 = sbr.rel (!%p15_p2) target bundleno = 3 (0x3), region = 75 }
 0x2ce   :  { %666 = vsyncpa [#allocation3], 1 }
 0x2cf   :  { %668 = vsyncpa [#allocation3 + $0x1], 1 }

</bundles_post_ra>
